<compile_context>
chip_gen: v7x
topology: tpu7x:2x2x1
jax: 0.10.0
libtpu: 0.0.40
codegen_flags: <defaults>
</compile_context>

<pallas_src>
import functools

import jax
import jax.numpy as jnp
from jax.experimental import pallas as pl
from jax.experimental.pallas import tpu as pltpu


def _round_up(v, m):
    return ((v + m - 1) // m) * m


def _pad2(x, rows, cols):
    return jnp.pad(x, ((0, rows - x.shape[0]), (0, cols - x.shape[1])))


# ----------------------------------------------------------------------------
# Pallas kernel: one GCN layer, row-tiled over the normalized adjacency.
#   out[tile] = (A[tile, :] @ X) @ W + b   (optionally ReLU'ed)
# A, X, W arrive as bf16 (MXU-native); both matmuls accumulate in f32.
# ----------------------------------------------------------------------------
def gcn_layer_kernel(a_ref, x_ref, w_ref, b_ref, out_ref, *, apply_relu):
    # Aggregate first: (A_tile @ X) -> [tm, Fin]. Associativity makes this
    # identical to A @ (X @ W) and avoids recomputing X @ W for every tile.
    agg = jnp.dot(a_ref[...], x_ref[...], preferred_element_type=jnp.float32)
    y = jnp.dot(agg.astype(jnp.bfloat16), w_ref[...],
                preferred_element_type=jnp.float32)
    y = y + b_ref[...]                       # bias kept in f32
    if apply_relu:
        y = jnp.maximum(y, 0.0)
    out_ref[...] = y.astype(out_ref.dtype)


def _gcn_layer(a_bf16, x_bf16, w_bf16, b_f32, *, apply_relu, out_dtype, tm):
    n_pad = a_bf16.shape[0]
    fin = x_bf16.shape[1]
    fout = w_bf16.shape[1]
    assert n_pad % tm == 0

    kernel = functools.partial(gcn_layer_kernel, apply_relu=apply_relu)
    return pl.pallas_call(
        kernel,
        out_shape=jax.ShapeDtypeStruct((n_pad, fout), out_dtype),
        grid_spec=pltpu.PrefetchScalarGridSpec(
            num_scalar_prefetch=0,
            grid=(n_pad // tm,),
            in_specs=[
                pl.BlockSpec((tm, n_pad), lambda i: (i, 0)),    # A row tile (streamed)
                pl.BlockSpec((n_pad, fin), lambda i: (0, 0)),   # full X / H (resident)
                pl.BlockSpec((fin, fout), lambda i: (0, 0)),    # W (resident)
                pl.BlockSpec((1, fout), lambda i: (0, 0)),      # bias (resident)
            ],
            out_specs=pl.BlockSpec((tm, fout), lambda i: (i, 0)),
        ),
        compiler_params=pltpu.CompilerParams(
            # Row tiles are independent -> megacore sharding on v7x; harmless
            # on v5e/v6e (single TensorCore).
            dimension_semantics=("parallel",),
        ),
    )(a_bf16, x_bf16, w_bf16, b_f32)


def binlex_gnn_forward(a_norm, x, w1, b1, w2, b2, *, tm=128):
    """relu(A @ x @ W1 + b1) -> A @ h @ W2 + b2, row-tiled Pallas kernels."""
    n, _ = x.shape
    hdim = w1.shape[1]
    odim = w2.shape[1]

    # Lane-dense padding: last dims -> multiples of 128 (full-width stores),
    # N -> multiple of the row tile.  Zero padding is exact: padded rows of A
    # are zero, so garbage in padded rows of h never reaches the real outputs,
    # and padded columns of W / b are zero.
    # NOTE(v7x VMEM): double-buffered A tile = 2 * tm * N_pad * 2 B (bf16);
    # tm=128 stays far below the 64 MiB VMEM even for large N — raise tm
    # toward 256/512 on v5e/v6e for more DMA/compute overlap.
    n_pad = _round_up(n, max(tm, 128))
    f_pad = _round_up(x.shape[1], 128)
    h_pad = _round_up(hdim, 128)
    o_pad = _round_up(odim, 128)

    a_p = _pad2(a_norm, n_pad, n_pad).astype(jnp.bfloat16)
    x_p = _pad2(x, n_pad, f_pad).astype(jnp.bfloat16)
    w1_p = _pad2(w1, f_pad, h_pad).astype(jnp.bfloat16)
    w2_p = _pad2(w2, h_pad, o_pad).astype(jnp.bfloat16)
    b1_p = _pad2(b1, 1, h_pad).astype(jnp.float32)
    b2_p = _pad2(b2, 1, o_pad).astype(jnp.float32)

    # Layer 1 emits bf16 so layer 2's MXU consumes it without a recast.
    h_p = _gcn_layer(a_p, x_p, w1_p, b1_p,
                     apply_relu=True, out_dtype=jnp.bfloat16, tm=tm)
    out_p = _gcn_layer(a_p, h_p, w2_p, b2_p,
                       apply_relu=False, out_dtype=jnp.float32, tm=tm)
    return out_p[:n, :odim]


# ----------------------------------------------------------------------------
# Glue (plain JAX): dense normalized adjacency from edge_index.
# PyG gcn_norm semantics: duplicate edges SUM (scatter-add), self-loops added
# on top of any existing ones, symmetric normalization with deg = rowsum(A_hat).
# For a static graph this is computed once and reused (hoisted out of the
# per-call path).
# ----------------------------------------------------------------------------
def normalized_adjacency(edge_index, num_nodes):
    src = edge_index[0]
    dst = edge_index[1]
    a = jnp.zeros((num_nodes, num_nodes), jnp.float32).at[dst, src].add(1.0)
    a_hat = a + jnp.eye(num_nodes, dtype=jnp.float32)
    deg = a_hat.sum(axis=1)
    d_inv_sqrt = jnp.where(deg > 0, 1.0 / jnp.sqrt(deg), 0.0)
    return d_inv_sqrt[:, None] * a_hat * d_inv_sqrt[None, :]


def reference_forward(a_norm, x, w1, b1, w2, b2):
    h = jnp.maximum(a_norm @ (x @ w1) + b1, 0.0)
    return a_norm @ (h @ w2) + b2


# ----------------------------------------------------------------------------
# Main
# ----------------------------------------------------------------------------
if __name__ == "__main__":
    num_nodes = 16
    num_edges = 24
    node_features_dim = 8
    hidden_dim = 32
    output_dim = 16

    key = jax.random.PRNGKey(0)
    k_x, k_e1, k_e2, k_w1, k_w2 = jax.random.split(key, 5)

    x = jax.random.normal(k_x, (num_nodes, node_features_dim), jnp.float32)
    src = jax.random.randint(k_e1, (num_edges,), 0, num_nodes)
    dst = jax.random.randint(k_e2, (num_edges,), 0, num_nodes)
    edge_index = jnp.stack([src, dst], axis=0)

    def glorot(k, fan_in, fan_out):
        limit = jnp.sqrt(6.0 / (fan_in + fan_out))
        return jax.random.uniform(k, (fan_in, fan_out), jnp.float32, -limit, limit)

    w1 = glorot(k_w1, node_features_dim, hidden_dim)
    b1 = jnp.zeros((1, hidden_dim), jnp.float32)
    w2 = glorot(k_w2, hidden_dim, output_dim)
    b2 = jnp.zeros((1, output_dim), jnp.float32)

    # Static graph: build the normalized adjacency once, outside the hot path.
    a_norm = normalized_adjacency(edge_index, num_nodes)

    fwd = jax.jit(binlex_gnn_forward)
    out = jax.block_until_ready(fwd(a_norm, x, w1, b1, w2, b2))

    ref = reference_forward(a_norm, x, w1, b1, w2, b2)
    assert out.shape == (num_nodes, output_dim)
    # bf16 MXU operands (f32 accumulation) -> loose-but-tight-enough tolerance.
    assert jnp.allclose(out, ref, atol=3e-2, rtol=3e-2), (
        float(jnp.max(jnp.abs(out - ref))))

    print("KERNEL_OK")
</pallas_src>

<mosaic_0001>
module attributes {stable_mosaic.version = 11 : i64} {
  func.func @gcn_layer_kernel(%arg0: i32, %arg1: memref<128x128xbf16, #tpu.memory_space<vmem>>, %arg2: memref<128x128xbf16, #tpu.memory_space<vmem>>, %arg3: memref<128x128xbf16, #tpu.memory_space<vmem>>, %arg4: memref<1x128xf32, #tpu.memory_space<vmem>>, %arg5: memref<128x128xf32, #tpu.memory_space<vmem>>) attributes {dimension_semantics = [#tpu.dimension_semantics<parallel>], iteration_bounds = array<i64: 1>, scalar_prefetch = 0 : i64, scratch_operands = 0 : i64, tpu.core_type = #tpu.core_type<tc>, window_params = [{transform_indices = @transform_0, window_bounds = array<i64: 128, 128>}, {pipeline_mode = #tpu.pipeline_mode<synchronous>, transform_indices = @transform_1, window_bounds = array<i64: 128, 128>}, {pipeline_mode = #tpu.pipeline_mode<synchronous>, transform_indices = @transform_2, window_bounds = array<i64: 128, 128>}, {pipeline_mode = #tpu.pipeline_mode<synchronous>, transform_indices = @transform_3, window_bounds = array<i64: 1, 128>}, {transform_indices = @transform_4, window_bounds = array<i64: 128, 128>}]} {
    %c0 = arith.constant 0 : index
    %c0_0 = arith.constant 0 : index
    %0 = vector.load %arg1[%c0, %c0_0] : memref<128x128xbf16, #tpu.memory_space<vmem>>, vector<128x128xbf16>
    %c0_1 = arith.constant 0 : index
    %c0_2 = arith.constant 0 : index
    %1 = vector.load %arg2[%c0_1, %c0_2] : memref<128x128xbf16, #tpu.memory_space<vmem>>, vector<128x128xbf16>
    %cst = arith.constant dense<0.000000e+00> : vector<128x128xf32>
    %2 = tpu.matmul %0, %1, %cst {dimension_numbers = #tpu.dot_dimension_numbers<[1], [0], [0], [1], [0, 0, 1, 1], [], []>} : vector<128x128xbf16>, vector<128x128xbf16>, vector<128x128xf32> -> vector<128x128xf32>
    %3 = arith.truncf %2 : vector<128x128xf32> to vector<128x128xbf16>
    %c0_3 = arith.constant 0 : index
    %c0_4 = arith.constant 0 : index
    %4 = vector.load %arg3[%c0_3, %c0_4] : memref<128x128xbf16, #tpu.memory_space<vmem>>, vector<128x128xbf16>
    %cst_5 = arith.constant dense<0.000000e+00> : vector<128x128xf32>
    %5 = tpu.matmul %3, %4, %cst_5 {dimension_numbers = #tpu.dot_dimension_numbers<[1], [0], [0], [1], [0, 0, 1, 1], [], []>} : vector<128x128xbf16>, vector<128x128xbf16>, vector<128x128xf32> -> vector<128x128xf32>
    %c0_6 = arith.constant 0 : index
    %c0_7 = arith.constant 0 : index
    %6 = vector.load %arg4[%c0_6, %c0_7] : memref<1x128xf32, #tpu.memory_space<vmem>>, vector<1x128xf32>
    %7 = vector.broadcast %6 : vector<1x128xf32> to vector<128x128xf32>
    %8 = arith.addf %5, %7 : vector<128x128xf32>
    %c0_8 = arith.constant 0 : index
    %c0_9 = arith.constant 0 : index
    %9 = vector.load %arg5[%c0_8, %c0_9] : memref<128x128xf32, #tpu.memory_space<vmem>>, vector<128x128xf32>
    tpu.vector_store %arg5[%c0_8, %c0_9], %8 {strides = array<i32>} : memref<128x128xf32, #tpu.memory_space<vmem>>, vector<128x128xf32>,
    return
  }
  func.func @transform_0(%arg0: i32) -> (i32, i32) {
    %c0_i32 = arith.constant 0 : i32
    %c0_i32_0 = arith.constant 0 : i32
    return %arg0, %c0_i32 : i32, i32
  }
  func.func @transform_1(%arg0: i32) -> (i32, i32) {
    %c0_i32 = arith.constant 0 : i32
    %c0_i32_0 = arith.constant 0 : i32
    %c0_i32_1 = arith.constant 0 : i32
    return %c0_i32, %c0_i32_0 : i32, i32
  }
  func.func @transform_2(%arg0: i32) -> (i32, i32) {
    %c0_i32 = arith.constant 0 : i32
    %c0_i32_0 = arith.constant 0 : i32
    %c0_i32_1 = arith.constant 0 : i32
    return %c0_i32, %c0_i32_0 : i32, i32
  }
  func.func @transform_3(%arg0: i32) -> (i32, i32) {
    %c0_i32 = arith.constant 0 : i32
    %c0_i32_0 = arith.constant 0 : i32
    %c0_i32_1 = arith.constant 0 : i32
    return %c0_i32, %c0_i32_0 : i32, i32
  }
  func.func @transform_4(%arg0: i32) -> (i32, i32) {
    %c0_i32 = arith.constant 0 : i32
    %c0_i32_0 = arith.constant 0 : i32
    return %arg0, %c0_i32 : i32, i32
  }
}

module attributes {stable_mosaic.version = 11 : i64} {
  func.func @gcn_layer_kernel(%arg0: i32, %arg1: memref<128x128xbf16, #tpu.memory_space<vmem>>, %arg2: memref<128x128xbf16, #tpu.memory_space<vmem>>, %arg3: memref<128x128xbf16, #tpu.memory_space<vmem>>, %arg4: memref<1x128xf32, #tpu.memory_space<vmem>>, %arg5: memref<128x128xbf16, #tpu.memory_space<vmem>>) attributes {dimension_semantics = [#tpu.dimension_semantics<parallel>], iteration_bounds = array<i64: 1>, scalar_prefetch = 0 : i64, scratch_operands = 0 : i64, tpu.core_type = #tpu.core_type<tc>, window_params = [{transform_indices = @transform_0, window_bounds = array<i64: 128, 128>}, {pipeline_mode = #tpu.pipeline_mode<synchronous>, transform_indices = @transform_1, window_bounds = array<i64: 128, 128>}, {pipeline_mode = #tpu.pipeline_mode<synchronous>, transform_indices = @transform_2, window_bounds = array<i64: 128, 128>}, {pipeline_mode = #tpu.pipeline_mode<synchronous>, transform_indices = @transform_3, window_bounds = array<i64: 1, 128>}, {transform_indices = @transform_4, window_bounds = array<i64: 128, 128>}]} {
    %c0 = arith.constant 0 : index
    %c0_0 = arith.constant 0 : index
    %0 = vector.load %arg1[%c0, %c0_0] : memref<128x128xbf16, #tpu.memory_space<vmem>>, vector<128x128xbf16>
    %c0_1 = arith.constant 0 : index
    %c0_2 = arith.constant 0 : index
    %1 = vector.load %arg2[%c0_1, %c0_2] : memref<128x128xbf16, #tpu.memory_space<vmem>>, vector<128x128xbf16>
    %cst = arith.constant dense<0.000000e+00> : vector<128x128xf32>
    %2 = tpu.matmul %0, %1, %cst {dimension_numbers = #tpu.dot_dimension_numbers<[1], [0], [0], [1], [0, 0, 1, 1], [], []>} : vector<128x128xbf16>, vector<128x128xbf16>, vector<128x128xf32> -> vector<128x128xf32>
    %3 = arith.truncf %2 : vector<128x128xf32> to vector<128x128xbf16>
    %c0_3 = arith.constant 0 : index
    %c0_4 = arith.constant 0 : index
    %4 = vector.load %arg3[%c0_3, %c0_4] : memref<128x128xbf16, #tpu.memory_space<vmem>>, vector<128x128xbf16>
    %cst_5 = arith.constant dense<0.000000e+00> : vector<128x128xf32>
    %5 = tpu.matmul %3, %4, %cst_5 {dimension_numbers = #tpu.dot_dimension_numbers<[1], [0], [0], [1], [0, 0, 1, 1], [], []>} : vector<128x128xbf16>, vector<128x128xbf16>, vector<128x128xf32> -> vector<128x128xf32>
    %c0_6 = arith.constant 0 : index
    %c0_7 = arith.constant 0 : index
    %6 = vector.load %arg4[%c0_6, %c0_7] : memref<1x128xf32, #tpu.memory_space<vmem>>, vector<1x128xf32>
    %7 = vector.broadcast %6 : vector<1x128xf32> to vector<128x128xf32>
    %8 = arith.addf %5, %7 : vector<128x128xf32>
    %cst_8 = arith.constant 0.000000e+00 : f32
    %9 = vector.broadcast %cst_8 : f32 to vector<128x128xf32>
    %10 = arith.maximumf %8, %9 : vector<128x128xf32>
    %11 = arith.truncf %10 : vector<128x128xf32> to vector<128x128xbf16>
    %c0_9 = arith.constant 0 : index
    %c0_10 = arith.constant 0 : index
    %12 = vector.load %arg5[%c0_9, %c0_10] : memref<128x128xbf16, #tpu.memory_space<vmem>>, vector<128x128xbf16>
    tpu.vector_store %arg5[%c0_9, %c0_10], %11 {strides = array<i32>} : memref<128x128xbf16, #tpu.memory_space<vmem>>, vector<128x128xbf16>,
    return
  }
  func.func @transform_0(%arg0: i32) -> (i32, i32) {
    %c0_i32 = arith.constant 0 : i32
    %c0_i32_0 = arith.constant 0 : i32
    return %arg0, %c0_i32 : i32, i32
  }
  func.func @transform_1(%arg0: i32) -> (i32, i32) {
    %c0_i32 = arith.constant 0 : i32
    %c0_i32_0 = arith.constant 0 : i32
    %c0_i32_1 = arith.constant 0 : i32
    return %c0_i32, %c0_i32_0 : i32, i32
  }
  func.func @transform_2(%arg0: i32) -> (i32, i32) {
    %c0_i32 = arith.constant 0 : i32
    %c0_i32_0 = arith.constant 0 : i32
    %c0_i32_1 = arith.constant 0 : i32
    return %c0_i32, %c0_i32_0 : i32, i32
  }
  func.func @transform_3(%arg0: i32) -> (i32, i32) {
    %c0_i32 = arith.constant 0 : i32
    %c0_i32_0 = arith.constant 0 : i32
    %c0_i32_1 = arith.constant 0 : i32
    return %c0_i32, %c0_i32_0 : i32, i32
  }
  func.func @transform_4(%arg0: i32) -> (i32, i32) {
    %c0_i32 = arith.constant 0 : i32
    %c0_i32_0 = arith.constant 0 : i32
    return %arg0, %c0_i32 : i32, i32
  }
}

</mosaic_0001>

<bundles_post_ra>
// kernel: binlex_gnn_forward.3
= control target key start
LH: loop header
LB: loop body
LE: loop exit
PB: predicated region body
PF: predicated region fallthrough
CT: control target
= control target key end

     0   :  { %s732_s1 = inlined_call_operand.vmem [shape: bf16[128,128], index: 1, kind: input, shape index: {}]   ;;  %s733_s0 = inlined_call_operand.vmem [shape: bf16[128,128], index: 0, kind: input, shape index: {}]   ;;  %s734_s2 = inlined_call_operand.vmem [shape: bf16[128,128], index: 2, kind: input, shape index: {}]   ;;  %s735_s3 = inlined_call_operand.vmem [shape: f32[1,128], index: 3, kind: input, shape index: {}]   ;;  %s736_s4 = inlined_call_operand.vmem [shape: f32[128,128], index: 4, kind: output, shape index: {}]  }
   0x1   :  { %v560_v0 = vld [vmem:[%s732_s1] sm:$0xff]   ;;  %v561_v1 = vld [vmem:[%s732_s1 + $0x8] sm:$0xff]   ;;  %v562_v2 = vld [vmem:[%s732_s1 + $0x10] sm:$0xff]  }
   0x2   :  { %496 = vmatprep.subr.bf16.mxu0 %v560_v0  ;;  %v563_v3 = vld [vmem:[%s732_s1 + $0x18] sm:$0xff]   ;;  %v568_v4 = vld [vmem:[%s733_s0] sm:$0xff]   ;;  %v565_v6 = vld [vmem:[%s732_s1 + $0x28] sm:$0xff]  }
   0x3   :  { %497 = vmatpush3.bf16.msra.mxu0 %v560_v0  ;;  %512 = vmatprep.mubr.bf16.mxu0 %v568_v4  ;;  %v564_v5 = vld [vmem:[%s732_s1 + $0x20] sm:$0xff]   ;;  %v577_v8 = vld [vmem:[%s734_s2 + $0x8] sm:$0xff]   ;;  %v566_v9 = vld [vmem:[%s732_s1 + $0x30] sm:$0xff]  }
   0x4   :  { %498 = vmatprep.subr.bf16.mxu0 %v561_v1  ;;  %v576_v7 = vld [vmem:[%s734_s2] sm:$0xff]   ;;  %v578_v10 = vld [vmem:[%s734_s2 + $0x10] sm:$0xff]   ;;  %v567_v11 = vld [vmem:[%s732_s1 + $0x38] sm:$0xff]  }
   0x5   :  { %528 = vmatprep.subr.bf16.mxu1 %v576_v7  ;;  %v579_v12 = vld [vmem:[%s734_s2 + $0x18] sm:$0xff]   ;;  %v580_v13 = vld [vmem:[%s734_s2 + $0x20] sm:$0xff]   ;;  %v569_v14 = vld [vmem:[%s733_s0 + $0x8] sm:$0xff]  }
   0x6   :  { %529 = vmatpush3.bf16.msra.mxu1 %v576_v7  ;;  %v570_v15 = vld [vmem:[%s733_s0 + $0x10] sm:$0xff]   ;;  %v581_v16 = vld [vmem:[%s734_s2 + $0x28] sm:$0xff]   ;;  %v571_v18 = vld [vmem:[%s733_s0 + $0x18] sm:$0xff]  }
   0x7   :  { %499 = vmatpush3.bf16.msra.mxu0 %v561_v1  ;;  %530 = vmatprep.subr.bf16.mxu1 %v577_v8  ;;  %v582_v17 = vld [vmem:[%s734_s2 + $0x30] sm:$0xff]   ;;  %v572_v19 = vld [vmem:[%s733_s0 + $0x20] sm:$0xff]   ;;  %v573_v20 = vld [vmem:[%s733_s0 + $0x28] sm:$0xff]  }
   0x8   :  { %500 = vmatprep.subr.bf16.mxu0 %v562_v2  ;;  %v574_v21 = vld [vmem:[%s733_s0 + $0x30] sm:$0xff]   ;;  %v575_v22 = vld [vmem:[%s733_s0 + $0x38] sm:$0xff]   ;;  %v455_v48 = vld [vmem:[%s735_s3] ss:$0 sm:$0xff] }
   0x9   :  { %v583_v23 = vld [vmem:[%s734_s2 + $0x38] sm:$0xff]  }
   0xa   :  { %531 = vmatpush3.bf16.msra.mxu1 %v577_v8 }
   0xb   :  { %501 = vmatpush3.bf16.msra.mxu0 %v562_v2  ;;  %532 = vmatprep.subr.bf16.mxu1 %v578_v10 }
   0xc   :  { %502 = vmatprep.subr.bf16.mxu0 %v563_v3 }
   0xe   :  { %533 = vmatpush3.bf16.msra.mxu1 %v578_v10 }
   0xf   :  { %503 = vmatpush3.bf16.msra.mxu0 %v563_v3  ;;  %534 = vmatprep.subr.bf16.mxu1 %v579_v12 }
  0x10   :  { %504 = vmatprep.subr.bf16.mxu0 %v564_v5 }
  0x12   :  { %535 = vmatpush3.bf16.msra.mxu1 %v579_v12 }
  0x13   :  { %505 = vmatpush3.bf16.msra.mxu0 %v564_v5  ;;  %536 = vmatprep.subr.bf16.mxu1 %v580_v13 }
  0x14   :  { %506 = vmatprep.subr.bf16.mxu0 %v565_v6 }
  0x16   :  { %537 = vmatpush3.bf16.msra.mxu1 %v580_v13 }
  0x17   :  { %507 = vmatpush3.bf16.msra.mxu0 %v565_v6  ;;  %538 = vmatprep.subr.bf16.mxu1 %v581_v16 }
  0x18   :  { %508 = vmatprep.subr.bf16.mxu0 %v566_v9 }
  0x1a   :  { %539 = vmatpush3.bf16.msra.mxu1 %v581_v16 }
  0x1b   :  { %509 = vmatpush3.bf16.msra.mxu0 %v566_v9  ;;  %540 = vmatprep.subr.bf16.mxu1 %v582_v17 }
  0x1c   :  { %510 = vmatprep.subr.bf16.mxu0 %v567_v11 }
  0x1e   :  { %541 = vmatpush3.bf16.msra.mxu1 %v582_v17 }
  0x1f   :  { %511 = vmatpush3.bf16.msra.mxu0 %v567_v11  ;;  %542 = vmatprep.subr.bf16.mxu1 %v583_v23 }
  0x22   :  { %513 = vmatmul.mubr.bf16.vlgmr.msra.gmra.mrb[0].mxu0 %v569_v14  ;;  %543 = vmatpush3.bf16.msra.mxu1 %v583_v23 }
  0x23   :  { %516 = vmatprep.mubr.bf16.mxu0 %v570_v15 }
  0x2a   :  { %517 = vmatmul.mubr.bf16.gmra.mrb[4].mxu0 %v571_v18 }
  0x2b   :  { %520 = vmatprep.mubr.bf16.mxu0 %v572_v19 }
  0x32   :  { %521 = vmatmul.mubr.bf16.gmra.mrb[8].mxu0 %v573_v20 }
  0x33   :  { %524 = vmatprep.mubr.bf16.mxu0 %v574_v21 }
  0x3a   :  { %525 = vmatmul.mubr.bf16.gmra.mrb[12].mxu0 %v575_v22 }
  0xf5   :  { %v514_v24 = vpop.f32.mrb[0].mxu0 }
  0xf6   :  { %v180_v25 = vpop.f32.mrb[1].mxu0 }
  0xf7   :  { %v515_v26 = vpop.f32.mrb[2].mxu0 }
  0xf8   :  { %v244_v27 = vpack.c.bf16 %v515_v26, %v514_v24  ;;  %v183_v28 = vpop.f32.mrb[3].mxu0 }
  0xf9   :  { %v243_v29 = vpack.c.bf16 %v183_v28, %v180_v25 }
  0xfb   :  { %544 = vmatprep.mubr.bf16.mxu1 %v243_v29 }
  0xfc   :  { %545 = vmatmul.mubr.bf16.vlgmr.msra.gmra.mrb[0].mxu1 %v244_v27 }
  0xfd   :  { %v518_v30 = vpop.f32.mrb[4].mxu0 }
  0xfe   :  { %v196_v31 = vpop.f32.mrb[5].mxu0 }
  0xff   :  { %v519_v32 = vpop.f32.mrb[6].mxu0 }
 0x100   :  { %v246_v33 = vpack.c.bf16 %v519_v32, %v518_v30  ;;  %v199_v34 = vpop.f32.mrb[7].mxu0 }
 0x101   :  { %v245_v35 = vpack.c.bf16 %v199_v34, %v196_v31 }
 0x103   :  { %548 = vmatprep.mubr.bf16.mxu1 %v245_v35 }
 0x104   :  { %549 = vmatmul.mubr.bf16.gmra.mrb[4].mxu1 %v246_v33 }
 0x105   :  { %v522_v36 = vpop.f32.mrb[8].mxu0 }
 0x106   :  { %v212_v37 = vpop.f32.mrb[9].mxu0 }
 0x107   :  { %v523_v38 = vpop.f32.mrb[10].mxu0 }
 0x108   :  { %v248_v39 = vpack.c.bf16 %v523_v38, %v522_v36  ;;  %v215_v40 = vpop.f32.mrb[11].mxu0 }
 0x109   :  { %v247_v41 = vpack.c.bf16 %v215_v40, %v212_v37 }
 0x10b   :  { %552 = vmatprep.mubr.bf16.mxu1 %v247_v41 }
 0x10c   :  { %553 = vmatmul.mubr.bf16.gmra.mrb[8].mxu1 %v248_v39 }
 0x10d   :  { %v526_v42 = vpop.f32.mrb[12].mxu0 }
 0x10e   :  { %v228_v43 = vpop.f32.mrb[13].mxu0 }
 0x10f   :  { %v527_v44 = vpop.f32.mrb[14].mxu0 }
 0x110   :  { %v250_v45 = vpack.c.bf16 %v527_v44, %v526_v42  ;;  %v231_v46 = vpop.f32.mrb[15].mxu0 }
 0x111   :  { %v249_v47 = vpack.c.bf16 %v231_v46, %v228_v43 }
 0x113   :  { %556 = vmatprep.mubr.bf16.mxu1 %v249_v47 }
 0x114   :  { %557 = vmatmul.mubr.bf16.gmra.mrb[12].mxu1 %v250_v45 }
 0x1cf   :  { %v546_v49 = vpop.f32.mrb[0].mxu1 }
 0x1d0   :  { %v365_v50 = vadd.f32 %v546_v49, %v455_v48  ;;  %v356_v51 = vpop.f32.mrb[1].mxu1 }
 0x1d1   :  { %v357_v52 = vadd.f32 %v455_v48, %v356_v51  ;;  %v547_v53 = vpop.f32.mrb[2].mxu1 }
 0x1d2   :  { %421 = vst [vmem:[%s736_s4 + $0x10] sm:$0xff] %v365_v50  ;;  %v368_v54 = vadd.f32 %v547_v53, %v455_v48  ;;  %v359_v55 = vpop.f32.mrb[3].mxu1 }
 0x1d3   :  { %419 = vst [vmem:[%s736_s4] sm:$0xff] %v357_v52  ;;  %v360_v56 = vadd.f32 %v455_v48, %v359_v55 }
 0x1d4   :  { %422 = vst [vmem:[%s736_s4 + $0x18] sm:$0xff] %v368_v54 }
 0x1d5   :  { %420 = vst [vmem:[%s736_s4 + $0x8] sm:$0xff] %v360_v56 }
 0x1d7   :  { %v550_v57 = vpop.f32.mrb[4].mxu1 }
 0x1d8   :  { %v381_v58 = vadd.f32 %v550_v57, %v455_v48  ;;  %v372_v59 = vpop.f32.mrb[5].mxu1 }
 0x1d9   :  { %v373_v60 = vadd.f32 %v455_v48, %v372_v59  ;;  %v551_v61 = vpop.f32.mrb[6].mxu1 }
 0x1da   :  { %425 = vst [vmem:[%s736_s4 + $0x30] sm:$0xff] %v381_v58  ;;  %v384_v62 = vadd.f32 %v551_v61, %v455_v48  ;;  %v375_v63 = vpop.f32.mrb[7].mxu1 }
 0x1db   :  { %423 = vst [vmem:[%s736_s4 + $0x20] sm:$0xff] %v373_v60  ;;  %v376_v0 = vadd.f32 %v455_v48, %v375_v63 }
 0x1dc   :  { %426 = vst [vmem:[%s736_s4 + $0x38] sm:$0xff] %v384_v62 }
 0x1dd   :  { %424 = vst [vmem:[%s736_s4 + $0x28] sm:$0xff] %v376_v0 }
 0x1df   :  { %v554_v1 = vpop.f32.mrb[8].mxu1 }
 0x1e0   :  { %v397_v2 = vadd.f32 %v554_v1, %v455_v48  ;;  %v388_v3 = vpop.f32.mrb[9].mxu1 }
 0x1e1   :  { %v389_v4 = vadd.f32 %v455_v48, %v388_v3  ;;  %v555_v5 = vpop.f32.mrb[10].mxu1 }
 0x1e2   :  { %429 = vst [vmem:[%s736_s4 + $0x50] sm:$0xff] %v397_v2  ;;  %v400_v6 = vadd.f32 %v555_v5, %v455_v48  ;;  %v391_v7 = vpop.f32.mrb[11].mxu1 }
 0x1e3   :  { %427 = vst [vmem:[%s736_s4 + $0x40] sm:$0xff] %v389_v4  ;;  %v392_v8 = vadd.f32 %v455_v48, %v391_v7 }
 0x1e4   :  { %430 = vst [vmem:[%s736_s4 + $0x58] sm:$0xff] %v400_v6 }
 0x1e5   :  { %428 = vst [vmem:[%s736_s4 + $0x48] sm:$0xff] %v392_v8 }
 0x1e7   :  { %v558_v9 = vpop.f32.mrb[12].mxu1 }
 0x1e8   :  { %v413_v10 = vadd.f32 %v558_v9, %v455_v48  ;;  %v404_v11 = vpop.f32.mrb[13].mxu1 }
 0x1e9   :  { %v405_v12 = vadd.f32 %v455_v48, %v404_v11  ;;  %v559_v13 = vpop.f32.mrb[14].mxu1 }
 0x1ea   :  { %433 = vst [vmem:[%s736_s4 + $0x70] sm:$0xff] %v413_v10  ;;  %v416_v14 = vadd.f32 %v559_v13, %v455_v48  ;;  %v407_v15 = vpop.f32.mrb[15].mxu1 }
 0x1eb   :  { %431 = vst [vmem:[%s736_s4 + $0x60] sm:$0xff] %v405_v12  ;;  %v408_v16 = vadd.f32 %v455_v48, %v407_v15 }
 0x1ec   :  { %434 = vst [vmem:[%s736_s4 + $0x78] sm:$0xff] %v416_v14 }
 0x1ed   :  { %432 = vst [vmem:[%s736_s4 + $0x68] sm:$0xff] %v408_v16 }

// kernel: binlex_gnn_forward.2
= control target key start
LH: loop header
LB: loop body
LE: loop exit
PB: predicated region body
PF: predicated region fallthrough
CT: control target
= control target key end

     0   :  { %s867_s1 = inlined_call_operand.vmem [shape: bf16[128,128], index: 1, kind: input, shape index: {}]   ;;  %s868_s0 = inlined_call_operand.vmem [shape: bf16[128,128], index: 0, kind: input, shape index: {}]   ;;  %s869_s2 = inlined_call_operand.vmem [shape: bf16[128,128], index: 2, kind: input, shape index: {}]   ;;  %s870_s3 = inlined_call_operand.vmem [shape: f32[1,128], index: 3, kind: input, shape index: {}]   ;;  %s871_s4 = inlined_call_operand.vmem [shape: bf16[128,128], index: 4, kind: output, shape index: {}]  }
   0x1   :  { %v719_v0 = vld [vmem:[%s867_s1] sm:$0xff]   ;;  %v720_v1 = vld [vmem:[%s867_s1 + $0x8] sm:$0xff]   ;;  %v721_v2 = vld [vmem:[%s867_s1 + $0x10] sm:$0xff]  }
   0x2   :  { %655 = vmatprep.subr.bf16.mxu0 %v719_v0  ;;  %v722_v3 = vld [vmem:[%s867_s1 + $0x18] sm:$0xff]   ;;  %v727_v4 = vld [vmem:[%s868_s0] sm:$0xff]   ;;  %v724_v6 = vld [vmem:[%s867_s1 + $0x28] sm:$0xff]  }
   0x3   :  { %656 = vmatpush3.bf16.msra.mxu0 %v719_v0  ;;  %671 = vmatprep.mubr.bf16.mxu0 %v727_v4  ;;  %v723_v5 = vld [vmem:[%s867_s1 + $0x20] sm:$0xff]   ;;  %v736_v8 = vld [vmem:[%s869_s2 + $0x8] sm:$0xff]   ;;  %v725_v9 = vld [vmem:[%s867_s1 + $0x30] sm:$0xff]  }
   0x4   :  { %657 = vmatprep.subr.bf16.mxu0 %v720_v1  ;;  %v735_v7 = vld [vmem:[%s869_s2] sm:$0xff]   ;;  %v737_v10 = vld [vmem:[%s869_s2 + $0x10] sm:$0xff]   ;;  %v726_v11 = vld [vmem:[%s867_s1 + $0x38] sm:$0xff]  }
   0x5   :  { %687 = vmatprep.subr.bf16.mxu1 %v735_v7  ;;  %v738_v12 = vld [vmem:[%s869_s2 + $0x18] sm:$0xff]   ;;  %v739_v13 = vld [vmem:[%s869_s2 + $0x20] sm:$0xff]   ;;  %v728_v14 = vld [vmem:[%s868_s0 + $0x8] sm:$0xff]  }
   0x6   :  { %688 = vmatpush3.bf16.msra.mxu1 %v735_v7  ;;  %v729_v15 = vld [vmem:[%s868_s0 + $0x10] sm:$0xff]   ;;  %v740_v16 = vld [vmem:[%s869_s2 + $0x28] sm:$0xff]   ;;  %v730_v18 = vld [vmem:[%s868_s0 + $0x18] sm:$0xff]  }
   0x7   :  { %658 = vmatpush3.bf16.msra.mxu0 %v720_v1  ;;  %689 = vmatprep.subr.bf16.mxu1 %v736_v8  ;;  %v741_v17 = vld [vmem:[%s869_s2 + $0x30] sm:$0xff]   ;;  %v731_v19 = vld [vmem:[%s868_s0 + $0x20] sm:$0xff]   ;;  %v732_v20 = vld [vmem:[%s868_s0 + $0x28] sm:$0xff]  }
   0x8   :  { %659 = vmatprep.subr.bf16.mxu0 %v721_v2  ;;  %v733_v21 = vld [vmem:[%s868_s0 + $0x30] sm:$0xff]   ;;  %v734_v22 = vld [vmem:[%s868_s0 + $0x38] sm:$0xff]   ;;  %v535_v48 = vld [vmem:[%s870_s3] ss:$0 sm:$0xff] }
   0x9   :  { %v742_v23 = vld [vmem:[%s869_s2 + $0x38] sm:$0xff]  }
   0xa   :  { %690 = vmatpush3.bf16.msra.mxu1 %v736_v8 }
   0xb   :  { %660 = vmatpush3.bf16.msra.mxu0 %v721_v2  ;;  %691 = vmatprep.subr.bf16.mxu1 %v737_v10 }
   0xc   :  { %661 = vmatprep.subr.bf16.mxu0 %v722_v3 }
   0xe   :  { %692 = vmatpush3.bf16.msra.mxu1 %v737_v10 }
   0xf   :  { %662 = vmatpush3.bf16.msra.mxu0 %v722_v3  ;;  %693 = vmatprep.subr.bf16.mxu1 %v738_v12 }
  0x10   :  { %663 = vmatprep.subr.bf16.mxu0 %v723_v5 }
  0x12   :  { %694 = vmatpush3.bf16.msra.mxu1 %v738_v12 }
  0x13   :  { %664 = vmatpush3.bf16.msra.mxu0 %v723_v5  ;;  %695 = vmatprep.subr.bf16.mxu1 %v739_v13 }
  0x14   :  { %665 = vmatprep.subr.bf16.mxu0 %v724_v6 }
  0x16   :  { %696 = vmatpush3.bf16.msra.mxu1 %v739_v13 }
  0x17   :  { %666 = vmatpush3.bf16.msra.mxu0 %v724_v6  ;;  %697 = vmatprep.subr.bf16.mxu1 %v740_v16 }
  0x18   :  { %667 = vmatprep.subr.bf16.mxu0 %v725_v9 }
  0x1a   :  { %698 = vmatpush3.bf16.msra.mxu1 %v740_v16 }
  0x1b   :  { %668 = vmatpush3.bf16.msra.mxu0 %v725_v9  ;;  %699 = vmatprep.subr.bf16.mxu1 %v741_v17 }
  0x1c   :  { %669 = vmatprep.subr.bf16.mxu0 %v726_v11 }
  0x1e   :  { %700 = vmatpush3.bf16.msra.mxu1 %v741_v17 }
  0x1f   :  { %670 = vmatpush3.bf16.msra.mxu0 %v726_v11  ;;  %701 = vmatprep.subr.bf16.mxu1 %v742_v23 }
  0x22   :  { %672 = vmatmul.mubr.bf16.vlgmr.msra.gmra.mrb[0].mxu0 %v728_v14  ;;  %702 = vmatpush3.bf16.msra.mxu1 %v742_v23 }
  0x23   :  { %675 = vmatprep.mubr.bf16.mxu0 %v729_v15 }
  0x2a   :  { %676 = vmatmul.mubr.bf16.gmra.mrb[4].mxu0 %v730_v18 }
  0x2b   :  { %679 = vmatprep.mubr.bf16.mxu0 %v731_v19 }
  0x32   :  { %680 = vmatmul.mubr.bf16.gmra.mrb[8].mxu0 %v732_v20 }
  0x33   :  { %683 = vmatprep.mubr.bf16.mxu0 %v733_v21 }
  0x3a   :  { %684 = vmatmul.mubr.bf16.gmra.mrb[12].mxu0 %v734_v22 }
  0xf5   :  { %v673_v24 = vpop.f32.mrb[0].mxu0 }
  0xf6   :  { %v180_v25 = vpop.f32.mrb[1].mxu0 }
  0xf7   :  { %v674_v26 = vpop.f32.mrb[2].mxu0 }
  0xf8   :  { %v244_v27 = vpack.c.bf16 %v674_v26, %v673_v24  ;;  %v183_v28 = vpop.f32.mrb[3].mxu0 }
  0xf9   :  { %v243_v29 = vpack.c.bf16 %v183_v28, %v180_v25 }
  0xfb   :  { %703 = vmatprep.mubr.bf16.mxu1 %v243_v29 }
  0xfc   :  { %704 = vmatmul.mubr.bf16.vlgmr.msra.gmra.mrb[0].mxu1 %v244_v27 }
  0xfd   :  { %v677_v30 = vpop.f32.mrb[4].mxu0 }
  0xfe   :  { %v196_v31 = vpop.f32.mrb[5].mxu0 }
  0xff   :  { %v678_v32 = vpop.f32.mrb[6].mxu0 }
 0x100   :  { %v246_v33 = vpack.c.bf16 %v678_v32, %v677_v30  ;;  %v199_v34 = vpop.f32.mrb[7].mxu0 }
 0x101   :  { %v245_v35 = vpack.c.bf16 %v199_v34, %v196_v31 }
 0x103   :  { %707 = vmatprep.mubr.bf16.mxu1 %v245_v35 }
 0x104   :  { %708 = vmatmul.mubr.bf16.gmra.mrb[4].mxu1 %v246_v33 }
 0x105   :  { %v681_v36 = vpop.f32.mrb[8].mxu0 }
 0x106   :  { %v212_v37 = vpop.f32.mrb[9].mxu0 }
 0x107   :  { %v682_v38 = vpop.f32.mrb[10].mxu0 }
 0x108   :  { %v248_v39 = vpack.c.bf16 %v682_v38, %v681_v36  ;;  %v215_v40 = vpop.f32.mrb[11].mxu0 }
 0x109   :  { %v247_v41 = vpack.c.bf16 %v215_v40, %v212_v37 }
 0x10b   :  { %711 = vmatprep.mubr.bf16.mxu1 %v247_v41 }
 0x10c   :  { %712 = vmatmul.mubr.bf16.gmra.mrb[8].mxu1 %v248_v39 }
 0x10d   :  { %v685_v42 = vpop.f32.mrb[12].mxu0 }
 0x10e   :  { %v228_v43 = vpop.f32.mrb[13].mxu0 }
 0x10f   :  { %v686_v44 = vpop.f32.mrb[14].mxu0 }
 0x110   :  { %v250_v45 = vpack.c.bf16 %v686_v44, %v685_v42  ;;  %v231_v46 = vpop.f32.mrb[15].mxu0 }
 0x111   :  { %v249_v47 = vpack.c.bf16 %v231_v46, %v228_v43 }
 0x113   :  { %715 = vmatprep.mubr.bf16.mxu1 %v249_v47 }
 0x114   :  { %716 = vmatmul.mubr.bf16.gmra.mrb[12].mxu1 %v250_v45 }
 0x1cf   :  { %v705_v49 = vpop.f32.mrb[0].mxu1 }
 0x1d0   :  { %v365_v50 = vadd.f32 %v705_v49, %v535_v48  ;;  %v356_v51 = vpop.f32.mrb[1].mxu1 }
 0x1d1   :  { %v357_v52 = vadd.f32 %v535_v48, %v356_v51  ;;  %v706_v53 = vpop.f32.mrb[2].mxu1 }
 0x1d2   :  { %v368_v54 = vadd.f32 %v706_v53, %v535_v48  ;;  %v359_v55 = vpop.f32.mrb[3].mxu1  ;;  %v421_v57 = vmax.f32 %v365_v50, 0.0 }
 0x1d3   :  { %v360_v56 = vadd.f32 %v535_v48, %v359_v55  ;;  %v419_v59 = vmax.f32 %v357_v52, 0.0 }
 0x1d4   :  { %v422_v58 = vmax.f32 %v368_v54, 0.0 }
 0x1d5   :  { %v420_v60 = vmax.f32 %v360_v56, 0.0 }
 0x1d6   :  { %v584_v61 = vpack.c.bf16 %v422_v58, %v421_v57 }
 0x1d7   :  { %v579_v62 = vpack.c.bf16 %v420_v60, %v419_v59  ;;  %v709_v63 = vpop.f32.mrb[4].mxu1 }
 0x1d8   :  { %616 = vst [vmem:[%s871_s4 + $0x8] sm:$0xff] %v584_v61   ;;  %v381_v0 = vadd.f32 %v709_v63, %v535_v48  ;;  %v372_v1 = vpop.f32.mrb[5].mxu1 }
 0x1d9   :  { %580 = vst [vmem:[%s871_s4] sm:$0xff] %v579_v62   ;;  %v373_v2 = vadd.f32 %v535_v48, %v372_v1  ;;  %v710_v3 = vpop.f32.mrb[6].mxu1 }
 0x1da   :  { %v384_v4 = vadd.f32 %v710_v3, %v535_v48  ;;  %v375_v5 = vpop.f32.mrb[7].mxu1  ;;  %v425_v7 = vmax.f32 %v381_v0, 0.0 }
 0x1db   :  { %v376_v6 = vadd.f32 %v535_v48, %v375_v5  ;;  %v423_v9 = vmax.f32 %v373_v2, 0.0 }
 0x1dc   :  { %v426_v8 = vmax.f32 %v384_v4, 0.0 }
 0x1dd   :  { %v424_v10 = vmax.f32 %v376_v6, 0.0 }
 0x1de   :  { %v594_v11 = vpack.c.bf16 %v426_v8, %v425_v7 }
 0x1df   :  { %v589_v12 = vpack.c.bf16 %v424_v10, %v423_v9  ;;  %v713_v13 = vpop.f32.mrb[8].mxu1 }
 0x1e0   :  { %618 = vst [vmem:[%s871_s4 + $0x18] sm:$0xff] %v594_v11   ;;  %v397_v14 = vadd.f32 %v713_v13, %v535_v48  ;;  %v388_v15 = vpop.f32.mrb[9].mxu1 }
 0x1e1   :  { %617 = vst [vmem:[%s871_s4 + $0x10] sm:$0xff] %v589_v12   ;;  %v389_v16 = vadd.f32 %v535_v48, %v388_v15  ;;  %v714_v17 = vpop.f32.mrb[10].mxu1 }
 0x1e2   :  { %v400_v18 = vadd.f32 %v714_v17, %v535_v48  ;;  %v391_v19 = vpop.f32.mrb[11].mxu1  ;;  %v429_v21 = vmax.f32 %v397_v14, 0.0 }
 0x1e3   :  { %v392_v20 = vadd.f32 %v535_v48, %v391_v19  ;;  %v427_v23 = vmax.f32 %v389_v16, 0.0 }
 0x1e4   :  { %v430_v22 = vmax.f32 %v400_v18, 0.0 }
 0x1e5   :  { %v428_v24 = vmax.f32 %v392_v20, 0.0 }
 0x1e6   :  { %v604_v25 = vpack.c.bf16 %v430_v22, %v429_v21 }
 0x1e7   :  { %v599_v26 = vpack.c.bf16 %v428_v24, %v427_v23  ;;  %v717_v27 = vpop.f32.mrb[12].mxu1 }
 0x1e8   :  { %620 = vst [vmem:[%s871_s4 + $0x28] sm:$0xff] %v604_v25   ;;  %v413_v28 = vadd.f32 %v717_v27, %v535_v48  ;;  %v404_v29 = vpop.f32.mrb[13].mxu1 }
 0x1e9   :  { %619 = vst [vmem:[%s871_s4 + $0x20] sm:$0xff] %v599_v26   ;;  %v405_v30 = vadd.f32 %v535_v48, %v404_v29  ;;  %v718_v31 = vpop.f32.mrb[14].mxu1 }
 0x1ea   :  { %v416_v32 = vadd.f32 %v718_v31, %v535_v48  ;;  %v407_v33 = vpop.f32.mrb[15].mxu1  ;;  %v433_v35 = vmax.f32 %v413_v28, 0.0 }
 0x1eb   :  { %v408_v34 = vadd.f32 %v535_v48, %v407_v33  ;;  %v431_v37 = vmax.f32 %v405_v30, 0.0 }
 0x1ec   :  { %v434_v36 = vmax.f32 %v416_v32, 0.0 }
 0x1ed   :  { %v432_v38 = vmax.f32 %v408_v34, 0.0 }
 0x1ee   :  { %v614_v39 = vpack.c.bf16 %v434_v36, %v433_v35 }
 0x1ef   :  { %v609_v40 = vpack.c.bf16 %v432_v38, %v431_v37 }
 0x1f0   :  { %622 = vst [vmem:[%s871_s4 + $0x38] sm:$0xff] %v614_v39  }
 0x1f1   :  { %621 = vst [vmem:[%s871_s4 + $0x30] sm:$0xff] %v609_v40  }

</bundles_post_ra>
